<compile_context>
chip_gen: v7x
topology: tpu7x:2x2x1
jax: 0.10.0
libtpu: 0.0.40
codegen_flags: <defaults>
</compile_context>

<pallas_src>
import jax
import jax.numpy as jnp
from jax.experimental import pallas as pl
from jax.experimental.pallas import tpu as pltpu

GRAPH_HIDDEN = 64     # graph_embed_func.graph_hidden_size
NODE_HIDDEN = 32      # node_hidden_size
EDGE_FEATURES_SIZE = 4
OUT_ROWS = 3          # packed output rows: logit / prob / log_prob
LOGIT_ROW, PROB_ROW, LOGP_ROW = 0, 1, 2


def add_edge_kernel(act_ref, g_ref, s_ref, wg_ref, ws_ref, b_ref, out_ref):
    # act_ref: [1, Bt] int32        (Bernoulli action per candidate edge)
    # g_ref:   [1, Dg] f32          (graph embedding, shared across the batch)
    # s_ref:   [Dn, Bt] f32         (candidate src embeddings, feature-major)
    # wg_ref:  [1, Dg] f32          (lane-dense weight row for the graph part)
    # ws_ref:  [Dn, 1]  f32         (weight column, broadcast over lanes)
    # b_ref:   [1, 1]   f32
    # out_ref: [OUT_ROWS, Bt] f32   (row 0: logit, row 1: prob, row 2: logp)
    g = g_ref[...].astype(jnp.float32)
    s = s_ref[...].astype(jnp.float32)
    wg = wg_ref[...].astype(jnp.float32)
    ws = ws_ref[...].astype(jnp.float32)

    # cat([g, s], 1) @ W.T + b == sum(g*Wg) + sum_over_features(s*Ws) + b
    # (VPU mul + XLU lane reduce for the shared graph term, sublane reduce for
    #  the per-decision src term; no MXU for a single output column.)
    g_dot = jnp.sum(g * wg, axis=-1, keepdims=True)            # [1, 1]
    s_dot = jnp.sum(s * ws, axis=0, keepdims=True)             # [1, Bt]
    logit = s_dot + (g_dot + b_ref[...])                       # [1, Bt]

    # Shared exponential for sigmoid and log-sigmoid (single EUP exp).
    e = jnp.exp(-jnp.abs(logit))                               # exp(-|logit|) in (0, 1]
    inv = 1.0 / (1.0 + e)
    prob = jnp.where(logit >= 0.0, inv, e * inv)               # sigmoid(logit), no inf

    # bernoulli_action_log_prob: logsigmoid(-logit) if action==0 else logsigmoid(logit)
    z = jnp.where(act_ref[...] == 0, -logit, logit)            # [1, Bt]
    logp = jnp.minimum(z, 0.0) - jnp.log1p(e)                  # stable logsigmoid(z)

    # Single lane-dense packed store: 3 sublanes x B lanes.
    sub = jax.lax.broadcasted_iota(jnp.int32, out_ref.shape, 0)
    out_ref[...] = jnp.where(sub == LOGIT_ROW, logit,
                   jnp.where(sub == PROB_ROW, prob,
                   jnp.where(sub == LOGP_ROW, logp, 0.0)))


def _pick_lane_tile(batch):
    """Lane-tile size for the 1-D parallel grid over B; None => gridless."""
    for t in (2048, 1024, 512, 256, 128):
        if batch % t == 0 and batch // t >= 2:
            return t
    return None


def _add_edge_pallas(actions, graph_embed, src_embeds_t, w_graph, w_src, bias):
    """Lane-major pallas_call. actions [1,B] i32, src_embeds_t [Dn,B] f32."""
    dg = graph_embed.shape[1]
    dn, batch = src_embeds_t.shape
    out_shape = jax.ShapeDtypeStruct((OUT_ROWS, batch), jnp.float32)
    tile = _pick_lane_tile(batch)

    if tile is None:
        # Small/odd B: gridless, everything resident as full-array VMEM blocks.
        vmem = pltpu.MemorySpace.VMEM
        return pl.pallas_call(
            add_edge_kernel,
            out_shape=out_shape,
            in_specs=[pl.BlockSpec(memory_space=vmem)] * 6,
            out_specs=pl.BlockSpec(memory_space=vmem),
        )(actions, graph_embed, src_embeds_t, w_graph, w_src, bias)

    # Large B: 1-D parallel grid over lane tiles (shards across TCs on v7x and
    # bounds per-step VMEM residency).
    return pl.pallas_call(
        add_edge_kernel,
        out_shape=out_shape,
        grid=(batch // tile,),
        in_specs=[
            pl.BlockSpec((1, tile), lambda i: (0, i)),      # actions
            pl.BlockSpec((1, dg), lambda i: (0, 0)),        # graph_embed (shared)
            pl.BlockSpec((dn, tile), lambda i: (0, i)),     # src embeddings
            pl.BlockSpec((1, dg), lambda i: (0, 0)),        # w_graph
            pl.BlockSpec((dn, 1), lambda i: (0, 0)),        # w_src column
            pl.BlockSpec((1, 1), lambda i: (0, 0)),         # bias
        ],
        out_specs=pl.BlockSpec((OUT_ROWS, tile), lambda i: (0, i)),
        compiler_params=pltpu.CompilerParams(
            dimension_semantics=("parallel",)),
    )(actions, graph_embed, src_embeds_t, w_graph, w_src, bias)


@jax.jit
def add_edge_batch_jit(actions_row, graph_embed, src_embeds_t, w_graph, w_src, bias):
    """Batched edge-decision scoring; returns the (3, B) packed slab as-is."""
    return _add_edge_pallas(actions_row, graph_embed, src_embeds_t,
                            w_graph, w_src, bias)


@jax.jit
def _add_edge_single_jit(action_arr, graph_embed, src_embed, w_graph, w_src, bias):
    """Single-decision path with fixed shapes (src_embed already [1, Dn])."""
    return _add_edge_pallas(action_arr, graph_embed, src_embed.T,
                            w_graph, w_src, bias)


def add_edge_forward(graph_embed, node_hv, params, action, training=True):
    """Mirrors AddEdge.forward (training path).

    graph_embed: [1, GRAPH_HIDDEN]       (output of graph_embed_func(g))
    node_hv:     [num_nodes, NODE_HIDDEN] (g.nodes[src_type].data['hv'])
    action:      python int (supervised Bernoulli action)
    Returns (to_add_edge, logit, prob, log_prob).
    """
    # Shape-stable jit: slice the variable-length node store OUTSIDE the jitted
    # function so the kernel never retraces as the graph grows.
    src = node_hv[-1:, :]                                       # [1, Dn]
    action_arr = jnp.full((1, 1), int(action), dtype=jnp.int32)
    packed = _add_edge_single_jit(action_arr, graph_embed, src,
                                  params["w_graph"], params["w_src"],
                                  params["bias"])               # (3, 1)
    to_add_edge = bool(action == 0)
    logit = packed[LOGIT_ROW:LOGIT_ROW + 1, :]
    prob = packed[PROB_ROW:PROB_ROW + 1, :]
    log_prob = packed[LOGP_ROW:LOGP_ROW + 1, :]
    return to_add_edge, logit, prob, log_prob


def add_edge_batch(graph_embed, src_embeds_t, actions_row, params):
    """Score B candidate edge decisions in one kernel launch.

    src_embeds_t: [NODE_HIDDEN, B] feature-major; actions_row: [1, B] int32.
    Returns a (3, B) slab: row 0 = logit, row 1 = prob, row 2 = log_prob.
    """
    return add_edge_batch_jit(actions_row, graph_embed, src_embeds_t,
                              params["w_graph"], params["w_src"],
                              params["bias"])


if __name__ == "__main__":
    key = jax.random.PRNGKey(0)
    (k_g, k_hv, k_hv2, k_wg, k_ws, k_b,
     k_act1, k_src1, k_act2, k_src2) = jax.random.split(key, 10)

    # Deterministic synthetic parameters for nn.Linear(GRAPH_HIDDEN + NODE_HIDDEN, 1):
    # graph part stored lane-dense [1, Dg], src part stored as a column [Dn, 1].
    scale = 1.0 / jnp.sqrt(GRAPH_HIDDEN + NODE_HIDDEN)
    params = {
        "w_graph": jax.random.normal(k_wg, (1, GRAPH_HIDDEN), jnp.float32) * scale,
        "w_src":   jax.random.normal(k_ws, (NODE_HIDDEN, 1), jnp.float32) * scale,
        "bias":    jax.random.normal(k_b, (1, 1), jnp.float32) * scale,
    }
    w_full = jnp.concatenate([params["w_graph"], params["w_src"].T], axis=1)  # [1, Dg+Dn]

    # Example inputs: precomputed graph embedding + per-node hidden states.
    graph_embed = jax.random.normal(k_g, (1, GRAPH_HIDDEN), jnp.float32)
    node_hv = jax.random.normal(k_hv, (8, NODE_HIDDEN), jnp.float32)

    # ---------- single-decision path (mirrors AddEdge.forward, training) ----------
    for action in (0, 1):
        to_add_edge, logit, prob, log_prob = add_edge_forward(
            graph_embed, node_hv, params, action, training=True)
        jax.block_until_ready((logit, prob, log_prob))

        x = jnp.concatenate([graph_embed, node_hv[-1].reshape(1, -1)], axis=1)
        logit_ref = x @ w_full.T + params["bias"]
        prob_ref = jax.nn.sigmoid(logit_ref)
        logp_ref = jax.nn.log_sigmoid(-logit_ref if action == 0 else logit_ref)

        assert to_add_edge == (action == 0)
        assert jnp.allclose(logit, logit_ref, atol=1e-5)
        assert jnp.allclose(prob, prob_ref, atol=1e-5)
        assert jnp.allclose(log_prob, logp_ref, atol=1e-5)

    # Growing graph: a different num_nodes reuses the same jit (no retrace --
    # the variable-length slice happens outside the jitted function).
    node_hv2 = jax.random.normal(k_hv2, (11, NODE_HIDDEN), jnp.float32)
    _, logit2, _, _ = add_edge_forward(graph_embed, node_hv2, params, 1)
    jax.block_until_ready(logit2)
    x2 = jnp.concatenate([graph_embed, node_hv2[-1].reshape(1, -1)], axis=1)
    assert jnp.allclose(logit2, x2 @ w_full.T + params["bias"], atol=1e-5)

    # ---------- batched scorer: lane-major, B decisions per launch ----------
    def check_batch(batch, k_a, k_s):
        actions_row = jax.random.randint(k_a, (1, batch), 0, 2, dtype=jnp.int32)
        src = jax.random.normal(k_s, (batch, NODE_HIDDEN), jnp.float32)
        packed = add_edge_batch(graph_embed, src.T, actions_row, params)
        jax.block_until_ready(packed)

        xb = jnp.concatenate(
            [jnp.broadcast_to(graph_embed, (batch, GRAPH_HIDDEN)), src], axis=1)
        logit_ref = xb @ w_full.T + params["bias"]                       # [B,1]
        prob_ref = jax.nn.sigmoid(logit_ref)
        logp_ref = jax.nn.log_sigmoid(
            jnp.where(actions_row.T == 0, -logit_ref, logit_ref))

        assert packed.shape == (OUT_ROWS, batch)
        assert jnp.allclose(packed[LOGIT_ROW], logit_ref[:, 0], atol=1e-5)
        assert jnp.allclose(packed[PROB_ROW], prob_ref[:, 0], atol=1e-5)
        assert jnp.allclose(packed[LOGP_ROW], logp_ref[:, 0], atol=1e-5)

    check_batch(8, k_act1, k_src1)    # small B: gridless full-array VMEM blocks
    check_batch(256, k_act2, k_src2)  # larger B: 1-D parallel grid (2 lane tiles of 128)

    print("KERNEL_OK")
</pallas_src>

<mosaic_0001>
module attributes {stable_mosaic.version = 11 : i64} {
  func.func @add_edge_kernel(%arg0: memref<1x1xi32, #tpu.memory_space<vmem>>, %arg1: memref<1x64xf32, #tpu.memory_space<vmem>>, %arg2: memref<32x1xf32, #tpu.memory_space<vmem>>, %arg3: memref<1x64xf32, #tpu.memory_space<vmem>>, %arg4: memref<32x1xf32, #tpu.memory_space<vmem>>, %arg5: memref<1x1xf32, #tpu.memory_space<vmem>>, %arg6: memref<3x1xf32, #tpu.memory_space<vmem>>) attributes {dimension_semantics = [], scalar_prefetch = 0 : i64, scratch_operands = 0 : i64, tpu.core_type = #tpu.core_type<tc>} {
    %c0 = arith.constant 0 : index
    %c0_0 = arith.constant 0 : index
    %0 = vector.load %arg1[%c0, %c0_0] : memref<1x64xf32, #tpu.memory_space<vmem>>, vector<1x64xf32>
    %c0_1 = arith.constant 0 : index
    %c0_2 = arith.constant 0 : index
    %1 = vector.load %arg2[%c0_1, %c0_2] : memref<32x1xf32, #tpu.memory_space<vmem>>, vector<32x1xf32>
    %c0_3 = arith.constant 0 : index
    %c0_4 = arith.constant 0 : index
    %2 = vector.load %arg3[%c0_3, %c0_4] : memref<1x64xf32, #tpu.memory_space<vmem>>, vector<1x64xf32>
    %c0_5 = arith.constant 0 : index
    %c0_6 = arith.constant 0 : index
    %3 = vector.load %arg4[%c0_5, %c0_6] : memref<32x1xf32, #tpu.memory_space<vmem>>, vector<32x1xf32>
    %4 = arith.mulf %0, %2 : vector<1x64xf32>
    %cst = arith.constant dense<0.000000e+00> : vector<1xf32>
    %5 = vector.multi_reduction <add>, %4, %cst [1] : vector<1x64xf32> to vector<1xf32>
    %6 = vector.shape_cast %5 : vector<1xf32> to vector<1x1xf32>
    %7 = arith.mulf %1, %3 : vector<32x1xf32>
    %cst_7 = arith.constant dense<0.000000e+00> : vector<1xf32>
    %8 = vector.multi_reduction <add>, %7, %cst_7 [0] : vector<32x1xf32> to vector<1xf32>
    %9 = vector.shape_cast %8 : vector<1xf32> to vector<1x1xf32>
    %c0_8 = arith.constant 0 : index
    %c0_9 = arith.constant 0 : index
    %10 = vector.load %arg5[%c0_8, %c0_9] : memref<1x1xf32, #tpu.memory_space<vmem>>, vector<1x1xf32>
    %11 = arith.addf %6, %10 : vector<1x1xf32>
    %12 = arith.addf %9, %11 : vector<1x1xf32>
    %13 = math.absf %12 : vector<1x1xf32>
    %cst_10 = arith.constant 0.000000e+00 : f32
    %14 = vector.broadcast %cst_10 : f32 to vector<1x1xf32>
    %15 = arith.subf %14, %13 : vector<1x1xf32>
    %16 = math.exp %15 : vector<1x1xf32>
    %cst_11 = arith.constant 1.000000e+00 : f32
    %17 = vector.broadcast %cst_11 : f32 to vector<1x1xf32>
    %18 = arith.addf %17, %16 : vector<1x1xf32>
    %cst_12 = arith.constant 1.000000e+00 : f32
    %19 = vector.broadcast %cst_12 : f32 to vector<1x1xf32>
    %20 = arith.divf %19, %18 : vector<1x1xf32>
    %cst_13 = arith.constant 0.000000e+00 : f32
    %21 = vector.broadcast %cst_13 : f32 to vector<1x1xf32>
    %22 = arith.cmpf oge, %12, %21 : vector<1x1xf32>
    %23 = arith.mulf %16, %20 : vector<1x1xf32>
    %24 = arith.select %22, %20, %23 : vector<1x1xi1>, vector<1x1xf32>
    %c0_14 = arith.constant 0 : index
    %c0_15 = arith.constant 0 : index
    %25 = vector.load %arg0[%c0_14, %c0_15] : memref<1x1xi32, #tpu.memory_space<vmem>>, vector<1x1xi32>
    %c0_i32 = arith.constant 0 : i32
    %26 = vector.broadcast %c0_i32 : i32 to vector<1x1xi32>
    %27 = arith.cmpi eq, %25, %26 : vector<1x1xi32>
    %cst_16 = arith.constant 0.000000e+00 : f32
    %28 = vector.broadcast %cst_16 : f32 to vector<1x1xf32>
    %29 = arith.subf %28, %12 : vector<1x1xf32>
    %30 = arith.select %27, %29, %12 : vector<1x1xi1>, vector<1x1xf32>
    %cst_17 = arith.constant 0.000000e+00 : f32
    %31 = vector.broadcast %cst_17 : f32 to vector<1x1xf32>
    %32 = arith.minimumf %30, %31 : vector<1x1xf32>
    %33 = math.log1p %16 : vector<1x1xf32>
    %34 = arith.subf %32, %33 : vector<1x1xf32>
    %35 = tpu.iota {dimensions = array<i32: 0>} : vector<3x1xi32>
    %c0_i32_18 = arith.constant 0 : i32
    %36 = vector.broadcast %c0_i32_18 : i32 to vector<3x1xi32>
    %37 = arith.cmpi eq, %35, %36 : vector<3x1xi32>
    %c1_i32 = arith.constant 1 : i32
    %38 = vector.broadcast %c1_i32 : i32 to vector<3x1xi32>
    %39 = arith.cmpi eq, %35, %38 : vector<3x1xi32>
    %c2_i32 = arith.constant 2 : i32
    %40 = vector.broadcast %c2_i32 : i32 to vector<3x1xi32>
    %41 = arith.cmpi eq, %35, %40 : vector<3x1xi32>
    %cst_19 = arith.constant 0.000000e+00 : f32
    %42 = vector.shape_cast %34 : vector<1x1xf32> to vector<1x1xf32>
    %43 = vector.broadcast %42 : vector<1x1xf32> to vector<3x1xf32>
    %44 = vector.broadcast %cst_19 : f32 to vector<3x1xf32>
    %45 = arith.select %41, %43, %44 : vector<3x1xi1>, vector<3x1xf32>
    %46 = vector.shape_cast %24 : vector<1x1xf32> to vector<1x1xf32>
    %47 = vector.broadcast %46 : vector<1x1xf32> to vector<3x1xf32>
    %48 = arith.select %39, %47, %45 : vector<3x1xi1>, vector<3x1xf32>
    %49 = vector.shape_cast %12 : vector<1x1xf32> to vector<1x1xf32>
    %50 = vector.broadcast %49 : vector<1x1xf32> to vector<3x1xf32>
    %51 = arith.select %37, %50, %48 : vector<3x1xi1>, vector<3x1xf32>
    %c0_20 = arith.constant 0 : index
    %c0_21 = arith.constant 0 : index
    %52 = vector.load %arg6[%c0_20, %c0_21] : memref<3x1xf32, #tpu.memory_space<vmem>>, vector<3x1xf32>
    tpu.vector_store %arg6[%c0_20, %c0_21], %51 {strides = array<i32>} : memref<3x1xf32, #tpu.memory_space<vmem>>, vector<3x1xf32>,
    return
  }
}

</mosaic_0001>

<bundles_post_ra>
// kernel: _add_edge_single_jit.1
= control target key start
LH: loop header
LB: loop body
LE: loop exit
PB: predicated region body
PF: predicated region fallthrough
CT: control target
= control target key end

     0   :  { %vm38_vm0 = vcmask 516096   ;;  %vm46_vm1 = vcmask 7168   ;;  %v88_v43 = vlaneseq  ;;  %vm110_vm8 = vcmask 2048   ;;  %s196_s1 = inlined_call_operand.vmem [shape: f32[1,64], index: 1, kind: input, shape index: {}]   ;;  %s197_s3 = inlined_call_operand.vmem [shape: f32[1,64], index: 3, kind: input, shape index: {}]   ;;  %s198_s0 = inlined_call_operand.<no memory space> [shape: s32[1,1], index: 0, kind: input, shape index: {}]   ;;  %s199_s5 = inlined_call_operand.<no memory space> [shape: f32[1,1], index: 5, kind: input, shape index: {}]   ;;  %s200_s2 = inlined_call_operand.vmem [shape: f32[32,1], index: 2, kind: input, shape index: {}]   ;;  %s201_s4 = inlined_call_operand.vmem [shape: f32[32,1], index: 4, kind: input, shape index: {}]   ;;  %s202_s6 = inlined_call_operand.vmem [shape: f32[3,1], index: 6, kind: output, shape index: {}]  }
   0x1   :  { %v27_v0 = vld [vmem:[%s196_s1] sm:$0x1]  ;;  %v11_v2 = vstv %s198_s0  ;;  %v13_v3 = vstv %s199_s5  ;;  %v29_v7 = vld [vmem:[%s200_s2 + $0x8] sm:$0xff] }
   0x2   :  { %v32_v1 = vld [vmem:[%s197_s3] sm:$0x1]  ;;  %12 = vst [vmem:[#allocation2] sm:$0x1] %v11_v2  ;;  %14 = vst [vmem:[#allocation3] sm:$0x1] %v13_v3 }
   0x3   :  { %v37_v4 = vmul.f32 %v32_v1, %v27_v0  ;;  %v28_v6 = vld [vmem:[%s200_s2] sm:$0xff]  ;;  %v34_v9 = vld [vmem:[%s201_s4 + $0x8] sm:$0xff]  ;;  %v30_v12 = vld [vmem:[%s200_s2 + $0x10] sm:$0xff]  ;;  %v89_v50 = vshrl.u32 %v88_v43, 7 }
   0x4   :  { %v33_v8 = vld [vmem:[%s201_s4] sm:$0xff]  ;;  %v43_v11 = vmul.f32 %v34_v9, %v29_v7  ;;  %v35_v13 = vld [vmem:[%s201_s4 + $0x10] sm:$0xff]  ;;  %v31_v17 = vld [vmem:[%s200_s2 + $0x18] sm:$0xff] }
   0x5   :  { %v39_v5 = vsel %vm38_vm0, %v37_v4, 0.0  ;;  %v42_v10 = vmul.f32 %v33_v8, %v28_v6  ;;  %v44_v14 = vmul.f32 %v35_v13, %v30_v12  ;;  %v36_v18 = vld [vmem:[%s201_s4 + $0x18] sm:$0xff]  ;;  %v96_v57 = vsub.s32 0, %v89_v50 }
   0x6   :  { %40 = vadd.xlane.f32.xlu0 %v39_v5  ;;  %v48_v16 = vsel %vm46_vm1, %v43_v11, 0.0  ;;  %v45_v20 = vmul.f32 %v36_v18, %v31_v17  ;;  %vm92_vm5 = vcmp.eq.s32.totalorder %v89_v50, 2  ;;  %vm91_vm6 = vcmp.eq.s32.totalorder %v89_v50, 1 }
   0x7   :  { %v47_v15 = vsel %vm46_vm1, %v42_v10, 0.0  ;;  %v50_v21 = vsel %vm46_vm1, %v44_v14, 0.0  ;;  %vm90_vm7 = vcmp.eq.s32.totalorder %v89_v50, 0 }
   0x8   :  { %v49_v19 = vadd.f32 %v48_v16, %v47_v15  ;;  %v52_v23 = vsel %vm46_vm1, %v45_v20, 0.0 }
   0x9   :  { %v60_v30 = vld [vmem:[#allocation3] sm:$0x1]  ;;  %v73_v40 = vld [vmem:[#allocation2] sm:$0x1] }
   0xa   :  { %v51_v22 = vadd.f32 %v50_v21, %v49_v19  ;;  %vm74_vm2 = vcmp.eq.s32.totalorder %v73_v40, 0 }
   0xc   :  { %v53_v24 = vadd.f32 %v52_v23, %v51_v22 }
   0xe   :  { %v54_v25 = vrot.slane %v53_v24, 4 }
  0x10   :  { %v55_v26 = vadd.f32 %v54_v25, %v53_v24 }
  0x12   :  { %v56_v27 = vrot.slane %v55_v26, 2 }
  0x14   :  { %v57_v28 = vadd.f32 %v56_v27, %v55_v26 }
  0x16   :  { %v58_v29 = vrot.slane %v57_v28, 1 }
  0x18   :  { %v59_v31 = vadd.f32 %v58_v29, %v57_v28 }
  0x93   :  { %v41_v32 = vpop.xlane.xlu0 %40 }
  0x94   :  { %v61_v33 = vadd.f32 %v60_v30, %v41_v32 }
  0x96   :  { %v62_v34 = vadd.f32 %v61_v33, %v59_v31 }
  0x98   :  { %v63_v35 = vand.u32 2147483647, %v62_v34  ;;  %v75_v42 = vsub.f32 0.0, %v62_v34  ;;  %vm70_vm4 = vcmp.ge.f32.partialorder %v62_v34, 0.0  ;;  %v108_v61 = vrot.slane %v62_v34, %v96_v57 }
  0x9a   :  { %v64_v36 = vsub.f32 0.0, %v63_v35  ;;  %v76_v47 = vsel %vm74_vm2, %v75_v42, %v62_v34 }
  0x9b   :  { %v77_v53 = vmin.f32 %v76_v47, 0.0 }
  0x9c   :  { %v65_v37 = vmul.f32 1.442695, %v64_v36 }
  0x9e   :  { %116 = vpow2.f32 %v65_v37 }
  0xa8   :  { %v117_v38 = vpop.eup %116 }
  0xa9   :  { %v67_v39 = vadd.f32 1.0, %v117_v38  ;;  %v81_v41 = vmul.f32 -0.5, %v117_v38  ;;  %v84_v45 = vand.u32 2147483647, %v117_v38 }
  0xab   :  { %118 = vrcp.f32 %v67_v39  ;;  %v82_v44 = vadd.f32 1.0, %v81_v41  ;;  %vm85_vm3 = vcmp.lt.f32.partialorder %v84_v45, 0.0004427343 }
  0xac   :  { %120 = vlog2.f32 %v67_v39 }
  0xad   :  { %v83_v52 = vmul.f32 %v117_v38, %v82_v44 }
  0xb5   :  { %v119_v46 = vpop.eup %118 }
  0xb6   :  { %v121_v48 = vpop.eup %120  ;;  %v71_v49 = vmul.f32 %v119_v46, %v117_v38 }
  0xb7   :  { %v80_v51 = vmul.f32 0.6931472, %v121_v48 }
  0xb8   :  { %v72_v55 = vsel %vm70_vm4, %v119_v46, %v71_v49 }
  0xb9   :  { %v86_v54 = vsel %vm85_vm3, %v83_v52, %v80_v51  ;;  %v103_v59 = vrot.slane %v72_v55, %v96_v57 }
  0xba   :  { %v87_v56 = vsub.f32 %v77_v53, %v86_v54 }
  0xbc   :  { %v97_v58 = vrot.slane %v87_v56, %v96_v57 }
  0xbe   :  { %v99_v60 = vsel %vm92_vm5, %v97_v58, 0.0 }
  0xbf   :  { %v104_v62 = vsel %vm91_vm6, %v103_v59, %v99_v60 }
  0xc0   :  { %v109_v63 = vsel %vm90_vm7, %v108_v61, %v104_v62 }
  0xc1   :  { %111 = vst.msk [vmem:[%s202_s6] sm:$0x7] %vm110_vm8, %v109_v63 }

</bundles_post_ra>
